<compile_context>
chip_gen: v5e
topology: v5e:2x2
jax: 0.10.0
libtpu: 0.0.40
codegen_flags: <defaults>
</compile_context>

<pallas_src>
import functools

import jax
import jax.numpy as jnp
from jax import lax
from jax.experimental import pallas as pl
from jax.experimental.pallas import tpu as pltpu


def _cdiv(a, b):
    return (a + b - 1) // b


def _round_up(a, b):
    return _cdiv(a, b) * b


def _focal_loss_kernel(x_ref, tgt_ref, alpha_ref, out_ref, acc_ref, *,
                       gamma, n_rows, inv_div):
    p = pl.program_id(0)
    i = pl.program_id(1)

    @pl.when(i == 0)
    def _():
        acc_ref[...] = jnp.zeros_like(acc_ref)

    x = x_ref[...].astype(jnp.float32)            # (TM, C) logits
    tgt = tgt_ref[...]                            # (TM, 1) int32 class ids
    alpha = alpha_ref[...].astype(jnp.float32)    # (1, C) per-class weights
    tm, c = x.shape

    # Mask rows past the true batch size (ragged last tile).
    tile_idx = p * pl.num_programs(1) + i
    rows = tile_idx * tm + lax.broadcasted_iota(jnp.int32, (tm, 1), 0)
    valid = rows < n_rows
    x = jnp.where(valid, x, 0.0)
    tgt = jnp.where(valid, tgt, 0)

    # Stable log-softmax pieces; gather the raw logit instead of building logp.
    m = jnp.max(x, axis=-1, keepdims=True)                              # (TM,1)
    lse = jnp.log(jnp.sum(jnp.exp(x - m), axis=-1, keepdims=True))      # (TM,1)

    cls_ids = lax.broadcasted_iota(jnp.int32, (tm, c), 1)
    onehot = (cls_ids == tgt).astype(jnp.float32)                       # (TM,C)
    xt = jnp.sum(x * onehot, axis=-1, keepdims=True)                    # logit@target
    at = jnp.sum(alpha * onehot, axis=-1, keepdims=True)                # alpha@target

    logpt = xt - m - lse                                                # (TM,1)
    logpt_w = logpt * at

    # Trace-time specialization of the focal weight (gamma is a static float).
    g = float(gamma)
    if g == 0.0:
        weighted = logpt_w
    else:
        one_minus_pt = 1.0 - jnp.exp(logpt)
        if g.is_integer() and g > 0:
            w = lax.integer_pow(one_minus_pt, int(g))   # VPU multiplies
        else:
            w = one_minus_pt ** g                       # lax.pow (EUP)
        weighted = w * logpt_w

    loss = jnp.where(valid, -1.0 * weighted + 1e-08, 0.0)               # (TM,1)
    acc_ref[...] += jnp.sum(loss, keepdims=True)                        # (1,1)

    @pl.when(i == pl.num_programs(1) - 1)
    def _():
        # Partition partial (already mean-scaled) goes into row 0 of this
        # partition's (8,1) output block; remaining rows stay zero so the
        # wrapper can just sum the output.
        sel = (lax.broadcasted_iota(jnp.int32, (8, 1), 0) == 0).astype(jnp.float32)
        out_ref[...] = acc_ref[...] * inv_div * sel


def _choose_tile_rows(n, c, itemsize, max_rows):
    # Keep double-buffered (logits + target) tiles around <= 12 MiB so the
    # kernel fits the 32 MiB scoped-VMEM limit requested below on every
    # generation (v7x: 64 MiB physical; v5e default scope is only 16 MiB).
    bytes_per_row = c * itemsize + 4
    budget = 12 * 1024 * 1024
    tm = budget // (2 * bytes_per_row)
    tm = max(8, min(max_rows, (tm // 8) * 8))
    tm = min(tm, _round_up(n, 8))
    return int(tm)


def focal_loss_clf(logits, target, alpha, *, gamma=0.0, size_average=True,
                   max_tile_rows=512):
    """Pallas equivalent of FocalLoss_clf(gamma, alpha, size_average)(logits, target)."""
    assert logits.ndim == 2
    n, c = logits.shape

    # Mirror the PyTorch __init__ handling of alpha.
    if isinstance(alpha, (float, int)) and not isinstance(alpha, bool):
        alpha = [float(alpha), 1.0 - float(alpha)]
    alpha2d = jnp.asarray(alpha, dtype=jnp.float32).reshape(1, c)
    tgt = target.reshape(n, 1).astype(jnp.int32)

    itemsize = jnp.dtype(logits.dtype).itemsize
    tm = _choose_tile_rows(n, c, itemsize, max_tile_rows)
    num_tiles = _cdiv(n, tm)
    # Shard the batch-tile reduction across two partitions (v7x's 2 TCs) when
    # it splits evenly; otherwise a single "arbitrary" partition.
    parts = 2 if (num_tiles >= 2 and num_tiles % 2 == 0) else 1
    tiles_per_part = num_tiles // parts

    kernel = functools.partial(
        _focal_loss_kernel,
        gamma=float(gamma),
        n_rows=n,
        inv_div=(1.0 / n) if size_average else 1.0,
    )

    cost = pl.CostEstimate(
        flops=int(8 * n * c),
        transcendentals=int(n * c + 2 * n),
        bytes_accessed=int(n * c * itemsize + n * 4 + c * 4 + parts * 8 * 4),
    )

    partials = pl.pallas_call(
        kernel,
        out_shape=jax.ShapeDtypeStruct((8 * parts, 1), jnp.float32),
        grid_spec=pltpu.PrefetchScalarGridSpec(
            num_scalar_prefetch=0,
            grid=(parts, tiles_per_part),
            in_specs=[
                pl.BlockSpec((tm, c), lambda p, i: (p * tiles_per_part + i, 0)),
                pl.BlockSpec((tm, 1), lambda p, i: (p * tiles_per_part + i, 0)),
                pl.BlockSpec((1, c), lambda p, i: (0, 0)),
            ],
            out_specs=pl.BlockSpec((8, 1), lambda p, i: (p, 0)),
            scratch_shapes=[pltpu.VMEM((1, 1), jnp.float32)],
        ),
        compiler_params=pltpu.CompilerParams(
            dimension_semantics=("parallel", "arbitrary"),
            vmem_limit_bytes=32 * 1024 * 1024,
        ),
        cost_estimate=cost,
    )(logits, tgt, alpha2d)   # logits kept in native dtype (no f32 HBM copy)

    return jnp.sum(partials)


def _reference(logits, target, alpha, gamma, size_average):
    # Plain-JAX reference mirroring the PyTorch forward.
    logits = logits.astype(jnp.float32)
    alpha = jnp.asarray(alpha, dtype=jnp.float32)
    logp = jax.nn.log_softmax(logits, axis=1)
    logpt = jnp.take_along_axis(logp, target.reshape(-1, 1), axis=1).reshape(-1)
    pt = jnp.exp(logpt)
    at = alpha[target]
    logpt = logpt * at
    loss = -1.0 * (1.0 - pt) ** gamma * logpt + 1e-08
    return loss.mean() if size_average else loss.sum()


if __name__ == "__main__":
    key = jax.random.PRNGKey(0)

    # Case 1: small module-default style shapes — N=8, C=4, gamma=2, mean.
    k1, k2 = jax.random.split(key)
    logits = jax.random.normal(k1, (8, 4), dtype=jnp.float32)
    target = jax.random.randint(k2, (8,), 0, 4, dtype=jnp.int32)
    alpha = [0.1, 0.2, 0.3, 0.4]
    out = focal_loss_clf(logits, target, alpha, gamma=2.0, size_average=True)
    out = jax.block_until_ready(out)
    ref = _reference(logits, target, jnp.asarray(alpha), 2.0, True)
    assert jnp.allclose(out, ref, rtol=1e-5, atol=1e-6), (out, ref)

    # Case 2: multi-tile grid with a ragged last tile (N % TM != 0),
    # non-integer gamma, sum reduction.
    k3, k4 = jax.random.split(k2)
    logits2 = jax.random.normal(k3, (37, 12), dtype=jnp.float32)
    target2 = jax.random.randint(k4, (37,), 0, 12, dtype=jnp.int32)
    alpha2 = jnp.linspace(0.1, 1.0, 12, dtype=jnp.float32)
    out2 = focal_loss_clf(logits2, target2, alpha2, gamma=1.5,
                          size_average=False, max_tile_rows=16)
    out2 = jax.block_until_ready(out2)
    ref2 = _reference(logits2, target2, alpha2, 1.5, False)
    assert jnp.allclose(out2, ref2, rtol=1e-5, atol=1e-5), (out2, ref2)

    # Case 3: even tile count -> batch tiles split across 2 partitions
    # (exercises the "parallel" outer grid axis and per-partition partials).
    k5, k6 = jax.random.split(k4)
    logits3 = jax.random.normal(k5, (64, 16), dtype=jnp.float32)
    target3 = jax.random.randint(k6, (64,), 0, 16, dtype=jnp.int32)
    alpha3 = jnp.full((16,), 0.5, dtype=jnp.float32)
    out3 = focal_loss_clf(logits3, target3, alpha3, gamma=0.0,
                          size_average=True, max_tile_rows=16)
    out3 = jax.block_until_ready(out3)
    ref3 = _reference(logits3, target3, alpha3, 0.0, True)
    assert jnp.allclose(out3, ref3, rtol=1e-5, atol=1e-6), (out3, ref3)

    print("KERNEL_OK")
</pallas_src>

<mosaic_0001>
module attributes {stable_mosaic.version = 11 : i64} {
  func.func @_focal_loss_kernel(%arg0: i32, %arg1: i32, %arg2: memref<8x4xf32, #tpu.memory_space<vmem>>, %arg3: memref<8x1xi32, #tpu.memory_space<vmem>>, %arg4: memref<1x4xf32, #tpu.memory_space<vmem>>, %arg5: memref<8x1xf32, #tpu.memory_space<vmem>>, %arg6: memref<1x1xf32, #tpu.memory_space<vmem>>) attributes {dimension_semantics = [#tpu.dimension_semantics<parallel>, #tpu.dimension_semantics<arbitrary>], iteration_bounds = array<i64: 1, 1>, scalar_prefetch = 0 : i64, scratch_operands = 1 : i64, tpu.core_type = #tpu.core_type<tc>, window_params = [{transform_indices = @transform_0, window_bounds = array<i64: 8, 4>}, {transform_indices = @transform_1, window_bounds = array<i64: 8, 1>}, {pipeline_mode = #tpu.pipeline_mode<synchronous>, transform_indices = @transform_2, window_bounds = array<i64: 1, 4>}, {transform_indices = @transform_3, window_bounds = array<i64: 8, 1>}]} {
    %c0_i32 = arith.constant 0 : i32
    %0 = arith.cmpi eq, %arg1, %c0_i32 : i32
    %1 = arith.extui %0 : i1 to i32
    %c0_i32_0 = arith.constant 0 : i32
    %2 = arith.cmpi ne, %1, %c0_i32_0 : i32
    scf.if %2 {
      %cst_23 = arith.constant 0.000000e+00 : f32
      %65 = vector.broadcast %cst_23 : f32 to vector<1x1xf32>
      %c0_24 = arith.constant 0 : index
      %c0_25 = arith.constant 0 : index
      %66 = vector.load %arg6[%c0_24, %c0_25] : memref<1x1xf32, #tpu.memory_space<vmem>>, vector<1x1xf32>
      tpu.vector_store %arg6[%c0_24, %c0_25], %65 {strides = array<i32>} : memref<1x1xf32, #tpu.memory_space<vmem>>, vector<1x1xf32>,
    } else {
    }
    %c0 = arith.constant 0 : index
    %c0_1 = arith.constant 0 : index
    %3 = vector.load %arg2[%c0, %c0_1] : memref<8x4xf32, #tpu.memory_space<vmem>>, vector<8x4xf32>
    %c0_2 = arith.constant 0 : index
    %c0_3 = arith.constant 0 : index
    %4 = vector.load %arg3[%c0_2, %c0_3] : memref<8x1xi32, #tpu.memory_space<vmem>>, vector<8x1xi32>
    %c0_4 = arith.constant 0 : index
    %c0_5 = arith.constant 0 : index
    %5 = vector.load %arg4[%c0_4, %c0_5] : memref<1x4xf32, #tpu.memory_space<vmem>>, vector<1x4xf32>
    %c1_i32 = arith.constant 1 : i32
    %6 = arith.muli %arg0, %c1_i32 : i32
    %7 = arith.addi %6, %arg1 : i32
    %c8_i32 = arith.constant 8 : i32
    %8 = arith.muli %7, %c8_i32 : i32
    %9 = tpu.iota {dimensions = array<i32: 0>} : vector<8x1xi32>
    %10 = vector.broadcast %8 : i32 to vector<8x1xi32>
    %11 = arith.addi %10, %9 : vector<8x1xi32>
    %c8_i32_6 = arith.constant 8 : i32
    %12 = vector.broadcast %c8_i32_6 : i32 to vector<8x1xi32>
    %13 = arith.cmpi slt, %11, %12 : vector<8x1xi32>
    %cst = arith.constant 0.000000e+00 : f32
    %14 = vector.shape_cast %13 : vector<8x1xi1> to vector<8x1xi1>
    %15 = vector.broadcast %14 : vector<8x1xi1> to vector<8x4xi1>
    %16 = vector.broadcast %cst : f32 to vector<8x4xf32>
    %17 = arith.select %15, %3, %16 : vector<8x4xi1>, vector<8x4xf32>
    %c0_i32_7 = arith.constant 0 : i32
    %18 = vector.broadcast %c0_i32_7 : i32 to vector<8x1xi32>
    %19 = arith.select %13, %4, %18 : vector<8x1xi1>, vector<8x1xi32>
    %cst_8 = arith.constant dense<0xFF800000> : vector<8xf32>
    %20 = vector.multi_reduction <maximumf>, %17, %cst_8 [1] : vector<8x4xf32> to vector<8xf32>
    %21 = vector.shape_cast %20 : vector<8xf32> to vector<8x1xf32>
    %22 = vector.broadcast %21 : vector<8x1xf32> to vector<8x4xf32>
    %23 = arith.subf %17, %22 : vector<8x4xf32>
    %24 = math.exp %23 : vector<8x4xf32>
    %cst_9 = arith.constant dense<0.000000e+00> : vector<8xf32>
    %25 = vector.multi_reduction <add>, %24, %cst_9 [1] : vector<8x4xf32> to vector<8xf32>
    %26 = vector.shape_cast %25 : vector<8xf32> to vector<8x1xf32>
    %27 = math.log %26 : vector<8x1xf32>
    %28 = tpu.iota {dimensions = array<i32: 1>} : vector<8x4xi32>
    %29 = vector.broadcast %19 : vector<8x1xi32> to vector<8x4xi32>
    %30 = arith.cmpi eq, %28, %29 : vector<8x4xi32>
    %31 = arith.extui %30 : vector<8x4xi1> to vector<8x4xi32>
    %32 = arith.sitofp %31 : vector<8x4xi32> to vector<8x4xf32>
    %33 = arith.mulf %17, %32 : vector<8x4xf32>
    %cst_10 = arith.constant dense<0.000000e+00> : vector<8xf32>
    %34 = vector.multi_reduction <add>, %33, %cst_10 [1] : vector<8x4xf32> to vector<8xf32>
    %35 = vector.shape_cast %34 : vector<8xf32> to vector<8x1xf32>
    %36 = vector.broadcast %5 : vector<1x4xf32> to vector<8x4xf32>
    %37 = arith.mulf %36, %32 : vector<8x4xf32>
    %cst_11 = arith.constant dense<0.000000e+00> : vector<8xf32>
    %38 = vector.multi_reduction <add>, %37, %cst_11 [1] : vector<8x4xf32> to vector<8xf32>
    %39 = vector.shape_cast %38 : vector<8xf32> to vector<8x1xf32>
    %40 = arith.subf %35, %21 : vector<8x1xf32>
    %41 = arith.subf %40, %27 : vector<8x1xf32>
    %42 = arith.mulf %41, %39 : vector<8x1xf32>
    %43 = math.exp %41 : vector<8x1xf32>
    %cst_12 = arith.constant 1.000000e+00 : f32
    %44 = vector.broadcast %cst_12 : f32 to vector<8x1xf32>
    %45 = arith.subf %44, %43 : vector<8x1xf32>
    %46 = arith.mulf %45, %45 : vector<8x1xf32>
    %47 = arith.mulf %46, %42 : vector<8x1xf32>
    %cst_13 = arith.constant -1.000000e+00 : f32
    %48 = vector.broadcast %cst_13 : f32 to vector<8x1xf32>
    %49 = arith.mulf %48, %47 : vector<8x1xf32>
    %cst_14 = arith.constant 9.99999993E-9 : f32
    %50 = vector.broadcast %cst_14 : f32 to vector<8x1xf32>
    %51 = arith.addf %49, %50 : vector<8x1xf32>
    %cst_15 = arith.constant 0.000000e+00 : f32
    %52 = vector.broadcast %cst_15 : f32 to vector<8x1xf32>
    %53 = arith.select %13, %51, %52 : vector<8x1xi1>, vector<8x1xf32>
    %c0_16 = arith.constant 0 : index
    %c0_17 = arith.constant 0 : index
    %54 = vector.load %arg6[%c0_16, %c0_17] : memref<1x1xf32, #tpu.memory_space<vmem>>, vector<1x1xf32>
    %55 = vector.shape_cast %53 : vector<8x1xf32> to vector<1x8x1xf32>
    %cst_18 = arith.constant dense<0.000000e+00> : vector<1xf32>
    %56 = vector.multi_reduction <add>, %55, %cst_18 [1, 2] : vector<1x8x1xf32> to vector<1xf32>
    %57 = vector.shape_cast %56 : vector<1xf32> to vector<1x1x1xf32>
    %58 = vector.extract %57[0, 0, 0] : f32 from vector<1x1x1xf32>
    %59 = vector.broadcast %58 : f32 to vector<1x1xf32>
    %60 = arith.addf %54, %59 : vector<1x1xf32>
    %c0_19 = arith.constant 0 : index
    %c0_20 = arith.constant 0 : index
    %61 = vector.load %arg6[%c0_19, %c0_20] : memref<1x1xf32, #tpu.memory_space<vmem>>, vector<1x1xf32>
    tpu.vector_store %arg6[%c0_19, %c0_20], %60 {strides = array<i32>} : memref<1x1xf32, #tpu.memory_space<vmem>>, vector<1x1xf32>,
    %c0_i32_21 = arith.constant 0 : i32
    %62 = arith.cmpi eq, %arg1, %c0_i32_21 : i32
    %63 = arith.extui %62 : i1 to i32
    %c0_i32_22 = arith.constant 0 : i32
    %64 = arith.cmpi ne, %63, %c0_i32_22 : i32
    scf.if %64 {
      %65 = tpu.iota {dimensions = array<i32: 0>} : vector<8x1xi32>
      %c0_i32_23 = arith.constant 0 : i32
      %66 = vector.broadcast %c0_i32_23 : i32 to vector<8x1xi32>
      %67 = arith.cmpi eq, %65, %66 : vector<8x1xi32>
      %68 = arith.extui %67 : vector<8x1xi1> to vector<8x1xi32>
      %69 = arith.sitofp %68 : vector<8x1xi32> to vector<8x1xf32>
      %c0_24 = arith.constant 0 : index
      %c0_25 = arith.constant 0 : index
      %70 = vector.load %arg6[%c0_24, %c0_25] : memref<1x1xf32, #tpu.memory_space<vmem>>, vector<1x1xf32>
      %cst_26 = arith.constant 1.250000e-01 : f32
      %71 = vector.broadcast %cst_26 : f32 to vector<1x1xf32>
      %72 = arith.mulf %70, %71 : vector<1x1xf32>
      %73 = vector.broadcast %72 : vector<1x1xf32> to vector<8x1xf32>
      %74 = arith.mulf %73, %69 : vector<8x1xf32>
      %c0_27 = arith.constant 0 : index
      %c0_28 = arith.constant 0 : index
      %75 = vector.load %arg5[%c0_27, %c0_28] : memref<8x1xf32, #tpu.memory_space<vmem>>, vector<8x1xf32>
      tpu.vector_store %arg5[%c0_27, %c0_28], %74 {strides = array<i32>} : memref<8x1xf32, #tpu.memory_space<vmem>>, vector<8x1xf32>,
    } else {
    }
    return
  }
  func.func @transform_0(%arg0: i32, %arg1: i32) -> (i32, i32) {
    %c1_i32 = arith.constant 1 : i32
    %0 = arith.muli %arg0, %c1_i32 : i32
    %1 = arith.addi %0, %arg1 : i32
    %c0_i32 = arith.constant 0 : i32
    %c0_i32_0 = arith.constant 0 : i32
    return %1, %c0_i32 : i32, i32
  }
  func.func @transform_1(%arg0: i32, %arg1: i32) -> (i32, i32) {
    %c1_i32 = arith.constant 1 : i32
    %0 = arith.muli %arg0, %c1_i32 : i32
    %1 = arith.addi %0, %arg1 : i32
    %c0_i32 = arith.constant 0 : i32
    %c0_i32_0 = arith.constant 0 : i32
    return %1, %c0_i32 : i32, i32
  }
  func.func @transform_2(%arg0: i32, %arg1: i32) -> (i32, i32) {
    %c0_i32 = arith.constant 0 : i32
    %c0_i32_0 = arith.constant 0 : i32
    %c0_i32_1 = arith.constant 0 : i32
    return %c0_i32, %c0_i32_0 : i32, i32
  }
  func.func @transform_3(%arg0: i32, %arg1: i32) -> (i32, i32) {
    %c0_i32 = arith.constant 0 : i32
    %c0_i32_0 = arith.constant 0 : i32
    return %arg0, %c0_i32 : i32, i32
  }
}

</mosaic_0001>

<bundles_post_ra>
// kernel: tpu_custom_call.1
= control target key start
LH: loop header
LB: loop body
LE: loop exit
PB: predicated region body
PF: predicated region fallthrough
CT: control target
= control target key end

     0   :  { %vm68_vm0 = vcmask 31744   ;;  %v169_v1 = vmov 0   ;;  %vm52_vm1 = vcmask 0   ;;  %v59_v4 = vlaneseq  ;;  %s211_s0 = inlined_call_operand.vmem [shape: f32[8,4], index: 0, kind: input, shape index: {}]   ;;  %s212_s2 = inlined_call_operand.vmem [shape: f32[1,4], index: 2, kind: input, shape index: {}]   ;;  %s213_s1 = inlined_call_operand.vmem [shape: s32[8,1], index: 1, kind: input, shape index: {}]   ;;  %s214_s3 = inlined_call_operand.vmem [shape: f32[8,1], index: 3, kind: output, shape index: {}]  }
   0x1   :  { %v54_v0 = vld [vmem:[%s211_s0] sm:$0xff]  ;;  %161 = vset.pattern.permute.xlu0 %v169_v1  ;;  %v170_v5 = vmov 0.0   ;;  %vm111_vm4 = vcmask 7168  }
   0x2   :  { %v69_v2 = vsel %vm68_vm0, %v54_v0, -inf  ;;  %v55_v3 = vld [vmem:[%s213_s1] sm:$0xff]  ;;  %53 = vst.msk [vmem:[#allocation2] sm:$0x1] %vm52_vm1, %v170_v5  ;;  %v60_v6 = vshrl.u32 %v59_v4, 7  ;;  %v81_v13 = vand.u32 127, %v59_v4 }
   0x3   :  { %70 = vmax.xlane.f32.xlu0 %v69_v2  ;;  %v162_v14 = vld [vmem:[%s212_s2] ss:$0 sm:$0xff] }
   0x4   :  { %vm129_vm2 = vcmp.eq.s32.totalorder %v60_v6, 0 }
   0x5   :  { %v156_v7 = vsel %vm129_vm2, 1.0, %v170_v5 }
   0x9   :  { %v110_v44 = vld [vmem:[#allocation2] sm:$0x1] }
  0x17   :  { %83 = vperm.xlu0 %161, %v55_v3  }
  0x76   :  { %v71_v8 = vpop.xlane.xlu0 %70 }
  0x77   :  { %v72_v9 = vsub.f32 %v54_v0, %v71_v8 }
  0x79   :  { %v73_v10 = vmul.f32 1.442695, %v72_v9 }
  0x7b   :  { %163 = vpow2.f32 %v73_v10 }
  0x81   :  { %v164_v11 = vpop.eup %163 }
  0x82   :  { %v75_v12 = vsel %vm68_vm0, %v164_v11, 0.0 }
  0x83   :  { %76 = vadd.xlane.f32.xlu1 %v75_v12 }
  0x89   :  { %v84_v15 = vpop.permute.xlu0 %83 }
  0x8a   :  { %vm85_vm3 = vcmp.eq.s32.totalorder %v81_v13, %v84_v15 }
  0x8b   :  { %v155_v16 = vsel %vm85_vm3, 1.0, %v170_v5 }
  0x8c   :  { %v95_v17 = vmul.f32 %v162_v14, %v155_v16  ;;  %v88_v18 = vmul.f32 %v155_v16, %v54_v0 }
  0x8e   :  { %v96_v19 = vsel %vm68_vm0, %v95_v17, 0.0  ;;  %v89_v20 = vsel %vm68_vm0, %v88_v18, 0.0 }
  0x8f   :  { %97 = vadd.xlane.f32.xlu2 %v96_v19  ;;  %90 = vadd.xlane.f32.xlu1 %v89_v20 }
  0xf6   :  { %v77_v21 = vpop.xlane.xlu1 %76 }
  0xf7   :  { %165 = vlog2.f32 %v77_v21 }
  0xfd   :  { %v166_v22 = vpop.eup %165 }
  0xfe   :  { %v79_v24 = vmul.f32 0.6931472, %v166_v22 }
 0x102   :  { %v91_v23 = vpop.xlane.xlu1 %90  ;;  %v98_v30 = vpop.xlane.xlu2 %97 }
 0x103   :  { %v99_v25 = vsub.f32 %v91_v23, %v71_v8 }
 0x105   :  { %v100_v26 = vsub.f32 %v99_v25, %v79_v24 }
 0x107   :  { %v102_v27 = vmul.f32 1.442695, %v100_v26  ;;  %v101_v31 = vmul.f32 %v100_v26, %v98_v30 }
 0x109   :  { %167 = vpow2.f32 %v102_v27 }
 0x10f   :  { %v168_v28 = vpop.eup %167 }
 0x110   :  { %v104_v29 = vsub.f32 1.0, %v168_v28 }
 0x112   :  { %v105_v32 = vmul.f32 %v104_v29, %v104_v29 }
 0x114   :  { %v106_v33 = vmul.f32 %v105_v32, %v101_v31 }
 0x116   :  { %v107_v34 = vmul.f32 -1.0, %v106_v33 }
 0x118   :  { %v108_v35 = vadd.f32 1e-08, %v107_v34 }
 0x11a   :  { %v112_v36 = vsel %vm111_vm4, %v108_v35, 0.0 }
 0x11b   :  { %113 = vadd.xlane.f32.xlu2 %v112_v36 }
 0x18e   :  { %v114_v37 = vpop.xlane.xlu2 %113 }
 0x18f   :  { %v115_v38 = vrot.slane %v114_v37, 4 }
 0x191   :  { %v116_v39 = vadd.f32 %v115_v38, %v114_v37 }
 0x193   :  { %v117_v40 = vrot.slane %v116_v39, 2 }
 0x195   :  { %v118_v41 = vadd.f32 %v117_v40, %v116_v39 }
 0x197   :  { %v119_v42 = vrot.slane %v118_v41, 1 }
 0x199   :  { %v120_v43 = vadd.f32 %v119_v42, %v118_v41 }
 0x19b   :  { %157 = vpush %v120_v43 }
 0x1cc   :  { %s158_s2 = spop %157 }
 0x1cd   :  { %v122_v45 = vstv %s158_s2 }
 0x1ce   :  { %v123_v46 = vadd.f32 %v122_v45, %v110_v44 }
 0x1d0   :  { %125 = vst.msk [vmem:[#allocation2] sm:$0x1] %vm52_vm1, %v123_v46 }
 0x1d7   :  { %v132_v47 = vld [vmem:[#allocation2] sm:$0x1] }
 0x1d8   :  { %v133_v48 = vmul.f32 0.125, %v132_v47 }
 0x1da   :  { %v135_v49 = vperm.slane %v133_v48, 0 }
 0x1dc   :  { %v137_v50 = vmul.f32 %v156_v7, %v135_v49 }
 0x1de   :  { %138 = vst.msk [vmem:[%s214_s3] sm:$0xff] %vm111_vm4, %v137_v50 }

</bundles_post_ra>
